<compile_context>
chip_gen: v6e
topology: v6e:2x2x1
jax: 0.10.0
libtpu: 0.0.40
codegen_flags: <defaults>
</compile_context>

<pallas_src>
import functools
import math

import jax
import jax.numpy as jnp
from jax.experimental import pallas as pl
from jax.experimental.pallas import tpu as pltpu


# ---------------------------------------------------------------------------
# Hardware-aware budgets
# ---------------------------------------------------------------------------
@functools.lru_cache(maxsize=None)
def _vmem_config():
    """Returns (per-operand block budget in bytes, scoped vmem limit in bytes)."""
    try:
        vmem_bytes = int(pltpu.get_tpu_info().vmem_capacity_bytes)
    except Exception:
        vmem_bytes = 0
    if vmem_bytes >= 96 * 1024 * 1024:
        # v5e / v6e class (128 MiB physical VMEM): bigger blocks, higher scoped limit.
        return 3 * 1024 * 1024, 96 * 1024 * 1024
    # v7x (64 MiB physical VMEM) or unknown: conservative so 4 double-buffered streams + f32
    # intermediates of the quant path stay well inside the scoped limit.
    return 2 * 1024 * 1024, 48 * 1024 * 1024


# ---------------------------------------------------------------------------
# Plain JAX helpers
# ---------------------------------------------------------------------------
def _hadamard_matrix(n: int, dtype=jnp.float32):
    """Unnormalized Sylvester Hadamard matrix H_n (n must be a power of 2)."""
    assert n & (n - 1) == 0, "head_dim must be a power of 2"
    h = jnp.array([[1.0]], dtype=dtype)
    while h.shape[0] < n:
        h = jnp.block([[h, h], [h, -h]])
    return h


def _sublane_multiple(dtype) -> int:
    return {4: 8, 2: 16, 1: 32}.get(jnp.dtype(dtype).itemsize, 8)


def _pick_tile(total: int, row_bytes: int, dtype, budget_bytes: int, *, want_multi: bool = True) -> int:
    """Second-to-last-dim tile for a cdiv grid: fits the byte budget, is a multiple of the sublane
    quantum (or the full extent), and optionally splits so the grid has >= 2 steps (v7x dual-TC)."""
    sub = _sublane_multiple(dtype)
    cap = max(sub, (budget_bytes // max(row_bytes, 1)) // sub * sub)
    tile = total if total <= cap else cap
    if want_multi and tile == total and total > sub:
        half = (total + 1) // 2
        tile = min(total, ((half + sub - 1) // sub) * sub)
    return tile


# ---------------------------------------------------------------------------
# Quantization math (QuaRot ActQuantizer, groupsize=-1 semantics per presented row)
# ---------------------------------------------------------------------------
def _quant_params(raw_min, raw_max, *, bits, sym, clip_ratio):
    """find_params on per-row stats.  Returns (scale, inv_scale, zero|None).  The reciprocal runs
    on the tiny stats vector only (EUP), never on the full tile.
    NOTE: jnp.round and torch.round are both round-half-to-even -> no semantic gap."""
    xmin = jnp.minimum(raw_min, 0.0) * clip_ratio
    xmax = jnp.maximum(raw_max, 0.0) * clip_ratio
    if sym:
        maxq = float(2 ** (bits - 1) - 1)
        amax = jnp.maximum(jnp.abs(xmin), xmax)
        scale = jnp.where(amax == 0.0, 1.0, amax * (1.0 / maxq))
        return scale, pl.reciprocal(scale, approx=True), None
    maxq = float(2 ** bits - 1)
    degen = jnp.logical_and(xmin == 0.0, xmax == 0.0)
    xmin = jnp.where(degen, -1.0, xmin)
    xmax = jnp.where(degen, 1.0, xmax)
    scale = (xmax - xmin) * (1.0 / maxq)
    inv = pl.reciprocal(scale, approx=True)
    zero = jnp.round(-xmin * inv)
    return scale, inv, zero


def _quant_apply(x, scale, inv, zero, *, bits, sym):
    """Quant-dequant with per-row (or per-lane-map) params.  The asym +zero/-zero pair is folded
    into shifted clip bounds: clip(round(x/s)+z, 0, M) - z == clip(round(x/s), -z, M-z)."""
    if sym:
        maxq = float(2 ** (bits - 1) - 1)
        return jnp.clip(jnp.round(x * inv), -(maxq + 1.0), maxq) * scale
    maxq = float(2 ** bits - 1)
    return jnp.clip(jnp.round(x * inv), -zero, maxq - zero) * scale


def _headwise_dequant(k_rot, *, head_dim, groups, bits, sym, clip_ratio):
    """Per-head quant-dequant of a (rows, groups*head_dim) f32 tile.  Every head_dim-wide lane
    segment is exactly one (b, h, s) row of K.  Stats are masked lane reductions per segment; the
    round/clip/scale pass runs exactly once on the whole tile using assembled per-lane maps."""
    if groups == 1:
        mn = jnp.min(k_rot, axis=-1, keepdims=True)
        mx = jnp.max(k_rot, axis=-1, keepdims=True)
        params = _quant_params(mn, mx, bits=bits, sym=sym, clip_ratio=clip_ratio)
        return _quant_apply(k_rot, *params, bits=bits, sym=sym)

    cols = k_rot.shape[-1]
    seg = jax.lax.broadcasted_iota(jnp.int32, (1, cols), 1) // head_dim   # (1, C) lane-segment id
    maps = None
    for g in range(groups):                 # static, small (<= 16)
        m = seg == g                        # (1, C) -> broadcast over rows in the compares below
        mn = jnp.min(jnp.where(m, k_rot, jnp.inf), axis=-1, keepdims=True)    # (rows, 1)
        mx = jnp.max(jnp.where(m, k_rot, -jnp.inf), axis=-1, keepdims=True)
        params = _quant_params(mn, mx, bits=bits, sym=sym, clip_ratio=clip_ratio)
        if maps is None:
            maps = list(params)             # segment-0 params; other lanes overwritten below
        else:
            maps = [None if p is None else jnp.where(m, p, mp) for p, mp in zip(params, maps)]
    return _quant_apply(k_rot, *maps, bits=bits, sym=sym)


def _tokenwise_dequant(k_rot, *, nh, ts, hd, bits, sym, clip_ratio):
    """Per-token quant-dequant: stats taken across all heads of each token.  k_rot is (nh*ts, hd)
    f32; returns (nh, ts, hd)."""
    k3 = k_rot.reshape(nh, ts, hd)
    mn = jnp.min(jnp.min(k3, axis=0), axis=-1, keepdims=True)   # (ts, 1)
    mx = jnp.max(jnp.max(k3, axis=0), axis=-1, keepdims=True)
    params = _quant_params(mn, mx, bits=bits, sym=sym, clip_ratio=clip_ratio)
    return _quant_apply(k3, *params, bits=bits, sym=sym)


# ---------------------------------------------------------------------------
# Kernels: lane-dense rows path (rotation + optional head-wise K quant)
# ---------------------------------------------------------------------------
def _rows_qk_kernel(q_ref, k_ref, hb_ref, qo_ref, ko_ref, *,
                    head_dim, groups, quantize_k, bits, sym, clip_ratio):
    hb = hb_ref[...]                                  # (C, C) block-diag scaled Hadamard, in dtype
    qo_ref[...] = jnp.dot(q_ref[...], hb, preferred_element_type=jnp.float32).astype(qo_ref.dtype)
    k_rot = jnp.dot(k_ref[...], hb, preferred_element_type=jnp.float32)
    if quantize_k:
        k_rot = _headwise_dequant(k_rot, head_dim=head_dim, groups=groups,
                                  bits=bits, sym=sym, clip_ratio=clip_ratio)
    ko_ref[...] = k_rot.astype(ko_ref.dtype)


def _rows_one_kernel(x_ref, hb_ref, o_ref, *, head_dim, groups, quantize, bits, sym, clip_ratio):
    x_rot = jnp.dot(x_ref[...], hb_ref[...], preferred_element_type=jnp.float32)
    if quantize:
        x_rot = _headwise_dequant(x_rot, head_dim=head_dim, groups=groups,
                                  bits=bits, sym=sym, clip_ratio=clip_ratio)
    o_ref[...] = x_rot.astype(o_ref.dtype)


# ---------------------------------------------------------------------------
# Kernels: token-wise K quant in the native (b, nh, s, hd) layout (no wrapper transposes)
# ---------------------------------------------------------------------------
def _tokenwise_qk_kernel(q_ref, k_ref, hs_ref, qo_ref, ko_ref, *, bits, sym, clip_ratio):
    _, nh, ts, hd = q_ref.shape
    hs = hs_ref[...]                                              # (hd, hd) scaled Hadamard
    q_rot = jnp.dot(q_ref[...].reshape(nh * ts, hd), hs, preferred_element_type=jnp.float32)
    qo_ref[...] = q_rot.reshape(1, nh, ts, hd).astype(qo_ref.dtype)
    k_rot = jnp.dot(k_ref[...].reshape(nh * ts, hd), hs, preferred_element_type=jnp.float32)
    dq = _tokenwise_dequant(k_rot, nh=nh, ts=ts, hd=hd, bits=bits, sym=sym, clip_ratio=clip_ratio)
    ko_ref[...] = dq.reshape(1, nh, ts, hd).astype(ko_ref.dtype)


def _tokenwise_k_kernel(k_ref, hs_ref, ko_ref, *, bits, sym, clip_ratio):
    _, nh, ts, hd = k_ref.shape
    k_rot = jnp.dot(k_ref[...].reshape(nh * ts, hd), hs_ref[...],
                    preferred_element_type=jnp.float32)
    dq = _tokenwise_dequant(k_rot, nh=nh, ts=ts, hd=hd, bits=bits, sym=sym, clip_ratio=clip_ratio)
    ko_ref[...] = dq.reshape(1, nh, ts, hd).astype(ko_ref.dtype)


# ---------------------------------------------------------------------------
# pallas_call wrappers
# ---------------------------------------------------------------------------
def _rows_geometry(x):
    b, nh, s, hd = x.shape
    groups = 1 if hd >= 128 else 128 // hd
    rows_total = b * nh * s
    while groups > 1 and rows_total % groups != 0:
        groups //= 2
    return rows_total // groups, groups * hd, groups


def _rows_call(tensors, hmat_scaled, *, head_dim, quantize_k, bits, sym, clip_ratio):
    """Lane-dense rotation (+ optional head-wise K quant) for one or two same-shaped tensors.
    The flattened view (R, C) with C a multiple of 128 keeps every load/store block lane-dense."""
    x0 = tensors[0]
    shape, dtype = x0.shape, x0.dtype
    R, C, groups = _rows_geometry(x0)

    hblk = hmat_scaled
    if groups > 1:
        hblk = jnp.kron(jnp.eye(groups, dtype=jnp.float32), hblk)
    hblk = hblk.astype(dtype)                         # bf16 inputs -> native bf16 MXU path

    budget_bytes, vmem_limit = _vmem_config()
    itemsize = jnp.dtype(dtype).itemsize
    row_tile = _pick_tile(R, C * itemsize, dtype, budget_bytes, want_multi=True)
    grid = (pl.cdiv(R, row_tile),)

    flat = [t.reshape(R, C) for t in tensors]         # contiguous reshape, no HBM round trip
    data_spec = pl.BlockSpec((row_tile, C), lambda i: (i, 0))
    had_spec = pl.BlockSpec((C, C), lambda i: (0, 0))
    cp = pltpu.CompilerParams(dimension_semantics=("parallel",), vmem_limit_bytes=vmem_limit)

    if len(tensors) == 2:
        kern = functools.partial(_rows_qk_kernel, head_dim=head_dim, groups=groups,
                                 quantize_k=quantize_k, bits=bits, sym=sym, clip_ratio=clip_ratio)
        outs = pl.pallas_call(
            kern,
            out_shape=(jax.ShapeDtypeStruct((R, C), dtype),
                       jax.ShapeDtypeStruct((R, C), dtype)),
            grid_spec=pltpu.PrefetchScalarGridSpec(
                num_scalar_prefetch=0, grid=grid,
                in_specs=[data_spec, data_spec, had_spec],
                out_specs=[data_spec, data_spec]),
            compiler_params=cp,
        )(*flat, hblk)
        return tuple(o.reshape(shape) for o in outs)

    kern = functools.partial(_rows_one_kernel, head_dim=head_dim, groups=groups,
                             quantize=quantize_k, bits=bits, sym=sym, clip_ratio=clip_ratio)
    out = pl.pallas_call(
        kern,
        out_shape=jax.ShapeDtypeStruct((R, C), dtype),
        grid_spec=pltpu.PrefetchScalarGridSpec(
            num_scalar_prefetch=0, grid=grid,
            in_specs=[data_spec, had_spec],
            out_specs=data_spec),
        compiler_params=cp,
    )(flat[0], hblk)
    return out.reshape(shape)


def _tokenwise_call(q, k, hmat_scaled, *, bits, sym, clip_ratio):
    """Token-wise K quant in the native (b, nh, s, hd) layout; per-token stats are computed across
    the head axis inside the kernel (no wrapper transposes).  When q is None only K is processed."""
    x0 = k if q is None else q
    b, nh, s, hd = x0.shape
    dtype = x0.dtype

    budget_bytes, vmem_limit = _vmem_config()
    itemsize = jnp.dtype(dtype).itemsize
    row_bytes = nh * max(hd, 128) * itemsize           # count VMEM lane padding when hd < 128
    ts = _pick_tile(s, row_bytes, dtype, budget_bytes, want_multi=(b < 2))
    grid = (b, pl.cdiv(s, ts))

    hs = hmat_scaled.astype(dtype)
    data_spec = pl.BlockSpec((1, nh, ts, hd), lambda i, j: (i, 0, j, 0))
    had_spec = pl.BlockSpec((hd, hd), lambda i, j: (0, 0))
    cp = pltpu.CompilerParams(dimension_semantics=("parallel", "parallel"),
                              vmem_limit_bytes=vmem_limit)

    if q is not None:
        kern = functools.partial(_tokenwise_qk_kernel, bits=bits, sym=sym, clip_ratio=clip_ratio)
        qo, ko = pl.pallas_call(
            kern,
            out_shape=(jax.ShapeDtypeStruct((b, nh, s, hd), dtype),
                       jax.ShapeDtypeStruct((b, nh, s, hd), dtype)),
            grid_spec=pltpu.PrefetchScalarGridSpec(
                num_scalar_prefetch=0, grid=grid,
                in_specs=[data_spec, data_spec, had_spec],
                out_specs=[data_spec, data_spec]),
            compiler_params=cp,
        )(q, k, hs)
        return qo, ko

    kern = functools.partial(_tokenwise_k_kernel, bits=bits, sym=sym, clip_ratio=clip_ratio)
    return pl.pallas_call(
        kern,
        out_shape=jax.ShapeDtypeStruct((b, nh, s, hd), dtype),
        grid_spec=pltpu.PrefetchScalarGridSpec(
            num_scalar_prefetch=0, grid=grid,
            in_specs=[data_spec, had_spec],
            out_specs=data_spec),
        compiler_params=cp,
    )(k, hs)


# ---------------------------------------------------------------------------
# Forward wrapper (mirrors QKRotationWrapper.forward)
# ---------------------------------------------------------------------------
def qk_rotation_forward(q, k, *, k_bits, k_groupsize, k_sym, k_clip_ratio):
    hd = q.shape[-1]
    assert k.shape[-1] == hd, "q and k must share head_dim"
    assert hd & (hd - 1) == 0, "head_dim must be a power of 2"
    assert k_groupsize in (-1, hd), "Only token-wise or head-wise quantization is supported"

    # Fold 1/sqrt(head_dim) into the Hadamard matrix once (wrapper-side, f32).
    hmat_scaled = _hadamard_matrix(hd) * jnp.float32(1.0 / math.sqrt(hd))

    quantize = k_bits != 16                 # 16-bit quantizer is the identity (rotation only)
    token_wise = quantize and k_groupsize == -1
    head_wise = quantize and k_groupsize == hd

    if q.shape == k.shape and q.dtype == k.dtype:
        if token_wise:
            return _tokenwise_call(q, k, hmat_scaled, bits=k_bits, sym=k_sym,
                                   clip_ratio=k_clip_ratio)
        return _rows_call((q, k), hmat_scaled, head_dim=hd, quantize_k=head_wise,
                          bits=k_bits, sym=k_sym, clip_ratio=k_clip_ratio)

    # GQA / MQA: K has fewer heads than Q -> process the two tensors with separate calls.
    q_out = _rows_call((q,), hmat_scaled, head_dim=hd, quantize_k=False,
                       bits=k_bits, sym=k_sym, clip_ratio=k_clip_ratio)
    if token_wise:
        k_out = _tokenwise_call(None, k, hmat_scaled, bits=k_bits, sym=k_sym,
                                clip_ratio=k_clip_ratio)
    else:
        k_out = _rows_call((k,), hmat_scaled, head_dim=hd, quantize_k=head_wise,
                           bits=k_bits, sym=k_sym, clip_ratio=k_clip_ratio)
    if k_out.dtype != q_out.dtype:          # torch does k.to(q)
        k_out = k_out.astype(q_out.dtype)
    return q_out, k_out


# ---------------------------------------------------------------------------
# Pure-JAX reference (PyTorch semantics, for correctness check)
# ---------------------------------------------------------------------------
def _ref_forward(q, k, *, k_bits, k_groupsize, k_sym, k_clip_ratio):
    hd = q.shape[-1]
    hmat = _hadamard_matrix(hd)

    def rot(x):
        y = jnp.einsum("...d,de->...e", x.astype(jnp.float32), hmat,
                       precision=jax.lax.Precision.HIGHEST) / math.sqrt(hd)
        return y.astype(x.dtype)

    q_out = rot(q)
    k_rot = rot(k)
    if k_bits == 16:
        return q_out, k_rot.astype(q.dtype)

    b, nh, s, _ = k.shape
    if k_groupsize == -1:
        rows = jnp.transpose(k_rot, (0, 2, 1, 3)).reshape(b * s, nh * hd)
    else:
        rows = k_rot.reshape(-1, hd)
    rows = rows.astype(jnp.float32)
    xmin = jnp.minimum(rows.min(-1, keepdims=True), 0.0) * k_clip_ratio
    xmax = jnp.maximum(rows.max(-1, keepdims=True), 0.0) * k_clip_ratio
    if k_sym:
        maxq = float(2 ** (k_bits - 1) - 1)
        amax = jnp.maximum(jnp.abs(xmin), xmax)
        scale = jnp.where(amax == 0.0, 1.0, amax / maxq)
        dq = jnp.clip(jnp.round(rows / scale), -(maxq + 1.0), maxq) * scale
    else:
        maxq = float(2 ** k_bits - 1)
        degen = (xmin == 0.0) & (xmax == 0.0)
        xmin = jnp.where(degen, -1.0, xmin)
        xmax = jnp.where(degen, 1.0, xmax)
        scale = (xmax - xmin) / maxq
        zero = jnp.round(-xmin / scale)
        dq = (jnp.clip(jnp.round(rows / scale) + zero, 0.0, maxq) - zero) * scale
    dq = dq.astype(q.dtype)
    if k_groupsize == -1:
        k_out = jnp.transpose(dq.reshape(b, s, nh, hd), (0, 2, 1, 3))
    else:
        k_out = dq.reshape(b, nh, s, hd)
    return q_out, k_out


# ---------------------------------------------------------------------------
if __name__ == "__main__":
    key = jax.random.PRNGKey(0)
    kq, kk, kg = jax.random.split(key, 3)

    # config: hidden_size=128, num_attention_heads=4 -> head_dim=32 (power of 2)
    bsz, num_heads, seq_len, head_dim = 2, 4, 8, 32
    q = jax.random.normal(kq, (bsz, num_heads, seq_len, head_dim), jnp.float32)
    k = jax.random.normal(kk, (bsz, num_heads, seq_len, head_dim), jnp.float32)

    def check(name, cfg, q_in, k_in, rot_tol, quant_tol):
        out = qk_rotation_forward(q_in, k_in, **cfg)
        jax.block_until_ready(out)
        q_out, k_out = out
        q_ref, k_ref = _ref_forward(q_in, k_in, **cfg)
        assert q_out.shape == q_in.shape and k_out.shape == k_in.shape, name
        assert q_out.dtype == q_in.dtype and k_out.dtype == q_in.dtype, name
        q_err = float(jnp.max(jnp.abs(q_out.astype(jnp.float32) - q_ref.astype(jnp.float32))))
        k_err = float(jnp.max(jnp.abs(k_out.astype(jnp.float32) - k_ref.astype(jnp.float32))))
        assert q_err < rot_tol, f"{name}: q err {q_err}"
        k_tol = rot_tol if cfg["k_bits"] == 16 else quant_tol
        assert k_err < k_tol, f"{name}: k err {k_err}"

    # 1) token-wise asymmetric 8-bit K quantization (k_groupsize = -1)
    check("token-asym", dict(k_bits=8, k_sym=False, k_clip_ratio=1.0, k_groupsize=-1),
          q, k, 3e-2, 1e-1)
    # 2) token-wise symmetric 8-bit
    check("token-sym", dict(k_bits=8, k_sym=True, k_clip_ratio=1.0, k_groupsize=-1),
          q, k, 3e-2, 1e-1)
    # 3) head-wise asymmetric 8-bit (k_groupsize = head_dim)
    check("head-asym", dict(k_bits=8, k_sym=False, k_clip_ratio=1.0, k_groupsize=head_dim),
          q, k, 3e-2, 1e-1)
    # 4) 16-bit K (identity quantizer: rotation only)
    check("rot-only", dict(k_bits=16, k_sym=False, k_clip_ratio=1.0, k_groupsize=-1),
          q, k, 3e-2, 3e-2)
    # 5) GQA: K has fewer heads than Q (separate-call fallback)
    k_gqa = jax.random.normal(kg, (bsz, 2, seq_len, head_dim), jnp.float32)
    check("gqa-token-asym", dict(k_bits=8, k_sym=False, k_clip_ratio=1.0, k_groupsize=-1),
          q, k_gqa, 3e-2, 1e-1)
    # 6) bf16 inputs (native bf16 MXU path, operands not upcast)
    check("bf16-token-asym", dict(k_bits=8, k_sym=False, k_clip_ratio=1.0, k_groupsize=-1),
          q.astype(jnp.bfloat16), k.astype(jnp.bfloat16), 6e-2, 1.5e-1)

    print("KERNEL_OK")
</pallas_src>

<mosaic_0001>
module attributes {stable_mosaic.version = 11 : i64} {
  func.func @_tokenwise_qk_kernel(%arg0: i32, %arg1: i32, %arg2: memref<1x4x8x32xf32, #tpu.memory_space<vmem>>, %arg3: memref<1x4x8x32xf32, #tpu.memory_space<vmem>>, %arg4: memref<32x32xf32, #tpu.memory_space<vmem>>, %arg5: memref<1x4x8x32xf32, #tpu.memory_space<vmem>>, %arg6: memref<1x4x8x32xf32, #tpu.memory_space<vmem>>) attributes {dimension_semantics = [#tpu.dimension_semantics<parallel>, #tpu.dimension_semantics<parallel>], iteration_bounds = array<i64: 2, 1>, scalar_prefetch = 0 : i64, scratch_operands = 0 : i64, tpu.core_type = #tpu.core_type<tc>, window_params = [{transform_indices = @transform_0, window_bounds = array<i64: 1, 4, 8, 32>}, {transform_indices = @transform_1, window_bounds = array<i64: 1, 4, 8, 32>}, {pipeline_mode = #tpu.pipeline_mode<synchronous>, transform_indices = @transform_2, window_bounds = array<i64: 32, 32>}, {transform_indices = @transform_3, window_bounds = array<i64: 1, 4, 8, 32>}, {transform_indices = @transform_4, window_bounds = array<i64: 1, 4, 8, 32>}]} {
    %c0 = arith.constant 0 : index
    %c0_0 = arith.constant 0 : index
    %0 = vector.load %arg4[%c0, %c0_0] : memref<32x32xf32, #tpu.memory_space<vmem>>, vector<32x32xf32>
    %c0_1 = arith.constant 0 : index
    %c0_2 = arith.constant 0 : index
    %c0_3 = arith.constant 0 : index
    %c0_4 = arith.constant 0 : index
    %1 = vector.load %arg2[%c0_1, %c0_2, %c0_3, %c0_4] : memref<1x4x8x32xf32, #tpu.memory_space<vmem>>, vector<1x4x8x32xf32>
    %2 = vector.shape_cast %1 : vector<1x4x8x32xf32> to vector<32x32xf32>
    %cst = arith.constant dense<0.000000e+00> : vector<32x32xf32>
    %3 = tpu.matmul %2, %0, %cst {dimension_numbers = #tpu.dot_dimension_numbers<[1], [0], [0], [1], [0, 0, 1, 1], [], []>} : vector<32x32xf32>, vector<32x32xf32>, vector<32x32xf32> -> vector<32x32xf32>
    %4 = vector.shape_cast %3 : vector<32x32xf32> to vector<1x4x8x32xf32>
    %c0_5 = arith.constant 0 : index
    %c0_6 = arith.constant 0 : index
    %c0_7 = arith.constant 0 : index
    %c0_8 = arith.constant 0 : index
    %5 = vector.load %arg5[%c0_5, %c0_6, %c0_7, %c0_8] : memref<1x4x8x32xf32, #tpu.memory_space<vmem>>, vector<1x4x8x32xf32>
    tpu.vector_store %arg5[%c0_5, %c0_6, %c0_7, %c0_8], %4 {strides = array<i32>} : memref<1x4x8x32xf32, #tpu.memory_space<vmem>>, vector<1x4x8x32xf32>,
    %c0_9 = arith.constant 0 : index
    %c0_10 = arith.constant 0 : index
    %c0_11 = arith.constant 0 : index
    %c0_12 = arith.constant 0 : index
    %6 = vector.load %arg3[%c0_9, %c0_10, %c0_11, %c0_12] : memref<1x4x8x32xf32, #tpu.memory_space<vmem>>, vector<1x4x8x32xf32>
    %7 = vector.shape_cast %6 : vector<1x4x8x32xf32> to vector<32x32xf32>
    %cst_13 = arith.constant dense<0.000000e+00> : vector<32x32xf32>
    %8 = tpu.matmul %7, %0, %cst_13 {dimension_numbers = #tpu.dot_dimension_numbers<[1], [0], [0], [1], [0, 0, 1, 1], [], []>} : vector<32x32xf32>, vector<32x32xf32>, vector<32x32xf32> -> vector<32x32xf32>
    %9 = vector.shape_cast %8 : vector<32x32xf32> to vector<4x8x32xf32>
    %cst_14 = arith.constant dense<0x7F800000> : vector<8x32xf32>
    %10 = vector.multi_reduction <minimumf>, %9, %cst_14 [0] : vector<4x8x32xf32> to vector<8x32xf32>
    %cst_15 = arith.constant dense<0x7F800000> : vector<8xf32>
    %11 = vector.multi_reduction <minimumf>, %10, %cst_15 [1] : vector<8x32xf32> to vector<8xf32>
    %12 = vector.shape_cast %11 : vector<8xf32> to vector<8x1xf32>
    %cst_16 = arith.constant dense<0xFF800000> : vector<8x32xf32>
    %13 = vector.multi_reduction <maximumf>, %9, %cst_16 [0] : vector<4x8x32xf32> to vector<8x32xf32>
    %cst_17 = arith.constant dense<0xFF800000> : vector<8xf32>
    %14 = vector.multi_reduction <maximumf>, %13, %cst_17 [1] : vector<8x32xf32> to vector<8xf32>
    %15 = vector.shape_cast %14 : vector<8xf32> to vector<8x1xf32>
    %cst_18 = arith.constant 0.000000e+00 : f32
    %16 = vector.broadcast %cst_18 : f32 to vector<8x1xf32>
    %17 = arith.minimumf %12, %16 : vector<8x1xf32>
    %cst_19 = arith.constant 1.000000e+00 : f32
    %18 = vector.broadcast %cst_19 : f32 to vector<8x1xf32>
    %19 = arith.mulf %17, %18 : vector<8x1xf32>
    %cst_20 = arith.constant 0.000000e+00 : f32
    %20 = vector.broadcast %cst_20 : f32 to vector<8x1xf32>
    %21 = arith.maximumf %15, %20 : vector<8x1xf32>
    %cst_21 = arith.constant 1.000000e+00 : f32
    %22 = vector.broadcast %cst_21 : f32 to vector<8x1xf32>
    %23 = arith.mulf %21, %22 : vector<8x1xf32>
    %cst_22 = arith.constant 0.000000e+00 : f32
    %24 = vector.broadcast %cst_22 : f32 to vector<8x1xf32>
    %25 = arith.cmpf oeq, %19, %24 : vector<8x1xf32>
    %cst_23 = arith.constant 0.000000e+00 : f32
    %26 = vector.broadcast %cst_23 : f32 to vector<8x1xf32>
    %27 = arith.cmpf oeq, %23, %26 : vector<8x1xf32>
    %28 = arith.andi %25, %27 : vector<8x1xi1>
    %cst_24 = arith.constant -1.000000e+00 : f32
    %29 = vector.broadcast %cst_24 : f32 to vector<8x1xf32>
    %30 = arith.select %28, %29, %19 : vector<8x1xi1>, vector<8x1xf32>
    %cst_25 = arith.constant 1.000000e+00 : f32
    %31 = vector.broadcast %cst_25 : f32 to vector<8x1xf32>
    %32 = arith.select %28, %31, %23 : vector<8x1xi1>, vector<8x1xf32>
    %33 = arith.subf %32, %30 : vector<8x1xf32>
    %cst_26 = arith.constant 0.00392156886 : f32
    %34 = vector.broadcast %cst_26 : f32 to vector<8x1xf32>
    %35 = arith.mulf %33, %34 : vector<8x1xf32>
    %36 = tpu.reciprocal %35 {approx = true} : vector<8x1xf32> -> vector<8x1xf32>
    %cst_27 = arith.constant 0.000000e+00 : f32
    %37 = vector.broadcast %cst_27 : f32 to vector<8x1xf32>
    %38 = arith.subf %37, %30 : vector<8x1xf32>
    %39 = arith.mulf %38, %36 : vector<8x1xf32>
    %40 = math.roundeven %39 : vector<8x1xf32>
    %41 = vector.shape_cast %36 : vector<8x1xf32> to vector<1x8x1xf32>
    %42 = vector.broadcast %41 : vector<1x8x1xf32> to vector<4x8x32xf32>
    %43 = arith.mulf %9, %42 : vector<4x8x32xf32>
    %44 = math.roundeven %43 : vector<4x8x32xf32>
    %cst_28 = arith.constant 0.000000e+00 : f32
    %45 = vector.broadcast %cst_28 : f32 to vector<8x1xf32>
    %46 = arith.subf %45, %40 : vector<8x1xf32>
    %cst_29 = arith.constant 2.550000e+02 : f32
    %47 = vector.broadcast %cst_29 : f32 to vector<8x1xf32>
    %48 = arith.subf %47, %40 : vector<8x1xf32>
    %49 = vector.shape_cast %46 : vector<8x1xf32> to vector<1x8x1xf32>
    %50 = vector.broadcast %49 : vector<1x8x1xf32> to vector<4x8x32xf32>
    %51 = arith.maximumf %50, %44 : vector<4x8x32xf32>
    %52 = vector.shape_cast %48 : vector<8x1xf32> to vector<1x8x1xf32>
    %53 = vector.broadcast %52 : vector<1x8x1xf32> to vector<4x8x32xf32>
    %54 = arith.minimumf %53, %51 : vector<4x8x32xf32>
    %55 = vector.shape_cast %35 : vector<8x1xf32> to vector<1x8x1xf32>
    %56 = vector.broadcast %55 : vector<1x8x1xf32> to vector<4x8x32xf32>
    %57 = arith.mulf %54, %56 : vector<4x8x32xf32>
    %58 = vector.shape_cast %57 : vector<4x8x32xf32> to vector<1x4x8x32xf32>
    %c0_30 = arith.constant 0 : index
    %c0_31 = arith.constant 0 : index
    %c0_32 = arith.constant 0 : index
    %c0_33 = arith.constant 0 : index
    %59 = vector.load %arg6[%c0_30, %c0_31, %c0_32, %c0_33] : memref<1x4x8x32xf32, #tpu.memory_space<vmem>>, vector<1x4x8x32xf32>
    tpu.vector_store %arg6[%c0_30, %c0_31, %c0_32, %c0_33], %58 {strides = array<i32>} : memref<1x4x8x32xf32, #tpu.memory_space<vmem>>, vector<1x4x8x32xf32>,
    return
  }
  func.func @transform_0(%arg0: i32, %arg1: i32) -> (i32, i32, i32, i32) {
    %c0_i32 = arith.constant 0 : i32
    %c0_i32_0 = arith.constant 0 : i32
    %c0_i32_1 = arith.constant 0 : i32
    return %arg0, %c0_i32, %arg1, %c0_i32_0 : i32, i32, i32, i32
  }
  func.func @transform_1(%arg0: i32, %arg1: i32) -> (i32, i32, i32, i32) {
    %c0_i32 = arith.constant 0 : i32
    %c0_i32_0 = arith.constant 0 : i32
    %c0_i32_1 = arith.constant 0 : i32
    return %arg0, %c0_i32, %arg1, %c0_i32_0 : i32, i32, i32, i32
  }
  func.func @transform_2(%arg0: i32, %arg1: i32) -> (i32, i32) {
    %c0_i32 = arith.constant 0 : i32
    %c0_i32_0 = arith.constant 0 : i32
    %c0_i32_1 = arith.constant 0 : i32
    return %c0_i32, %c0_i32_0 : i32, i32
  }
  func.func @transform_3(%arg0: i32, %arg1: i32) -> (i32, i32, i32, i32) {
    %c0_i32 = arith.constant 0 : i32
    %c0_i32_0 = arith.constant 0 : i32
    %c0_i32_1 = arith.constant 0 : i32
    return %arg0, %c0_i32, %arg1, %c0_i32_0 : i32, i32, i32, i32
  }
  func.func @transform_4(%arg0: i32, %arg1: i32) -> (i32, i32, i32, i32) {
    %c0_i32 = arith.constant 0 : i32
    %c0_i32_0 = arith.constant 0 : i32
    %c0_i32_1 = arith.constant 0 : i32
    return %arg0, %c0_i32, %arg1, %c0_i32_0 : i32, i32, i32, i32
  }
}

</mosaic_0001>

<bundles_post_ra>
// kernel: tpu_custom_call.1
= control target key start
LH: loop header
LB: loop body
LE: loop exit
PB: predicated region body
PF: predicated region fallthrough
CT: control target
= control target key end

     0   :  { %s1530_s0 = inlined_call_operand.hbm [shape: f32[2,4,8,32], index: 0, kind: input, shape index: {}]   ;;  %s1531_s1 = inlined_call_operand.hbm [shape: f32[2,4,8,32], index: 1, kind: input, shape index: {}]   ;;  %s1532_s2 = inlined_call_operand.hbm [shape: f32[32,32], index: 2, kind: input, shape index: {}]   ;;  %s1533_s3 = inlined_call_operand.hbm [shape: f32[2,4,8,32], index: 3, kind: output, shape index: {0}]   ;;  %s1534_s4 = inlined_call_operand.hbm [shape: f32[2,4,8,32], index: 4, kind: output, shape index: {1}]  }
   0x1   :  { %1541 = sst [smem:[#allocation18_spill]] %s1532_s2 }
   0x2   :  { %10 = vsyncpa [#allocation3], 0 }
   0x3   :  { %12 = vsyncpa [#allocation3 + $0x1], 0 }
   0x4   :  { %13 = vsyncpa [#allocation6], 0 }
   0x5   :  { %15 = vsyncpa [#allocation6 + $0x1], 0 }
   0x6   :  { %16 = vsyncpa [#allocation4], 0 }
   0x7   :  { %18 = vsyncpa [#allocation4 + $0x1], 0 }
   0x8   :  { %19 = vsyncpa [#allocation10], 0 }
   0x9   :  { %21 = vsyncpa [#allocation10 + $0x1], 0  ;;  %s1209_s15 = smov 0   ;;  %s1211_s16 = smov 0  }
   0xa   :  { %s1213_s17 = smov 0   ;;  %s1215_s18 = smov 0  }
   0xb   :  { %s1217_s19 = smov 0   ;;  %s1219_s20 = smov 0  }
   0xc LB: > { %1542 = sst [smem:[#allocation16_spill]] %s1169_s19  ;;  %s1240_s21 = sadd.s32 4294967295, %s1173_s20   ;;  %s1173_s20 = sphi %s1219_s20, %s27_s20   ;;  %s1169_s19 = sphi %s1217_s19, %s1560_s19   ;;  %s1165_s18 = sphi %s1215_s18, %s1559_s18   ;;  %s1161_s17 = sphi %s1213_s17, %s1563_s17   ;;  %s1157_s16 = sphi %s1211_s16, %s1562_s16   ;;  %s1153_s15 = sphi %s1209_s15, %s1561_s15  }
   0xd   : > { %s764_s22 = sadd.s32 4294967294, %s1173_s20   ;;  %p61_p0 = scmp.ne.s32.totalorder %s1157_s16, %s1153_s15 }
   0xe   : > { %p62_p1 = scmp.eq.s32.totalorder %s1240_s21, 0  ;;  %p142_p3 = scmp.eq.s32.totalorder %s764_s22, 1 }
   0xf   : > { %p765_p5 = scmp.ge.s32.totalorder %s1173_s20, 1  ;;  %p177_p7 = scmp.lt.s32.totalorder %s1173_s20, 3 }
  0x10   : > { %p1249_p4 = por %p62_p1, %p61_p0  ;;  %p1254_p6 = por %p142_p3, %p61_p0 }
  0x11   : > { %p1259_p8 = pnand %p765_p5, %p177_p7  ;;  %s1175_s26 = smov [#allocation7]  }
  0x12   : > { %s1544_s24 = scalar_select %p1254_p6, 1, 0 }
  0x13   : > { %s189_s27 = sshll.u32 %s1175_s26, 4  ;;  %p896_p9 = pneg %p1259_p8  ;;  %s190_s27 = int_to_ptr.vmem [resolvable:$true] %s189_s27 }
  0x14   : > { %s39_s29 = sadd.s32 1, %s1169_s19  ;;  %s984_s30 = scalar_lea.vmem %s190_s27, 512 }
  0x15   : > { %p1268_p11 = pnand %p896_p9, %p62_p1  ;;  %p985_p13 = scmp.ne.s32.totalorder %s190_s27, %s984_s30 }
  0x16   : > { %p992_p5 = scmp.lt.s32.totalorder %s190_s27, %s190_s27  ;;  %p993_p7 = scmp.lt.s32.totalorder %s984_s30, %s984_s30 }
  0x17   : > { %p975_p12 = pneg %p1268_p11 }
  0x18   : > { %p994_p2 = por %p993_p7, %p992_p5 }
  0x19   : > { %p987_p0 = pnand %p985_p13, %p975_p12 }
  0x1b   : > { %p988_p3 = pneg %p987_p0 }
  0x1d   : > { %p995_p6 = pnand %p994_p2, %p988_p3 }
  0x1f   : > { %998 = shalt.err (!%p995_p6)
}
  0x20   : > { %s1535_s5 = smov 128   ;;  %s1537_s6 = smov 8  }
  0x21   : > { %s1547_s2 = sld [smem:[#allocation18_spill]]  ;;  %p41_p2 = scmp.ge.s32.totalorder %s39_s29, 2 }
  0x22   : > { %s48_s9 = sadd.s32 1, %s1161_s17  ;;  %p55_p6 = scmp.ne.s32.totalorder %s1161_s17, %s1157_s16 }
  0x23   : > { %p56_p9 = scmp.eq.s32.totalorder %s1173_s20, 0  ;;  %s1565_s29 = smov (%p41_p2, %s39_s29), 0 }
  0x24   : > { %1548 = sst [smem:[#allocation17_spill]] %s1565_s29  ;;  %p1550_p13 = scmp.eq.s32.totalorder %s1240_s21, 1 }
  0x25   : > { %p1289_p12 = por %p56_p9, %p55_p6  ;;  %s43_s12 = ssub.s32 %s1169_s19, %s1565_s29 }
  0x26   : > { %p1295_p0 = por %p1550_p13, %p55_p6  ;;  %p915_p3 = scmp.lt.s32.totalorder %s1173_s20, 2 }
  0x27   : > { %899 = dma.hbm_to_vmem [thread:$0]  (!%p1268_p11), %s1547_s2, 512, %s190_s27, [#allocation6], %s1535_s5, %s1535_s5, %s1537_s6  }
  0x28   : > { %p46_p11 = scmp.eq.s32.totalorder %s43_s12, 0  ;;  %s203_s13 = sand.u32 1, %s1161_s17  }
  0x29   : > { %s768_s14 = sshll.u32 %s203_s13, 5  ;;  %s796_s26 = sshll.u32 %s1169_s19, 9 }
  0x2a   : > { %s1304_s22 = scalar_select %p46_p11, %s1161_s17, %s48_s9  }
  0x2b   : > { %s214_s30 = scalar_lea.hbm %s1530_s0, %s796_s26  ;;  %s207_s7 = scalar_lea.vmem [#allocation2], %s768_s14 }
  0x2c   : > { %s215_s8 = sshll.u32 %s207_s7, 4  ;;  %p1312_p5 = pnand %p915_p3, %p1289_p12  ;;  %s216_s8 = int_to_ptr.vmem [resolvable:$true] %s215_s8 }
  0x2d   : > { %s1319_s9 = scalar_lea.hbm %s1531_s1, %s796_s26  ;;  %s229_s12 = scalar_lea.vmem [#allocation5], %s768_s14 }
  0x2e   : > { %s237_s29 = sshll.u32 %s229_s12, 4  ;;  %s204_s19 = scalar_lea.sflag [#allocation3], %s203_s13  ;;  %s238_s29 = int_to_ptr.vmem [resolvable:$true] %s237_s29 }
  0x2f   : > { %p1001_p7 = pneg %p1312_p5  ;;  %s1012_s27 = scalar_lea.vmem %s216_s8, 512 }
  0x30   : > { %p1013_p2 = scmp.ne.s32.totalorder %s216_s8, %s1012_s27  ;;  %s1178_s10 = smov [#allocation2]  }
  0x31   : > { %s1017_s28 = sshll.u32 %s1178_s10, 4  ;;  %s1018_s28 = int_to_ptr.vmem [resolvable:$false] %s1017_s28 }
  0x32   : > { %p1015_p6 = pnand %p1013_p2, %p1001_p7  ;;  %s1019_s7 = scalar_lea.vmem %s1018_s28, 1024 }
  0x33   : > { %p1020_p12 = scmp.lt.s32.totalorder %s216_s8, %s1018_s28  ;;  %p1021_p13 = scmp.lt.s32.totalorder %s1019_s7, %s1012_s27 }
  0x34   : > { %p1016_p9 = pneg %p1015_p6 }
  0x35   : > { %p1022_p3 = por %p1021_p13, %p1020_p12 }
  0x37   : > { %p1023_p11 = pnand %p1022_p3, %p1016_p9 }
  0x39   : > { %1026 = shalt.err (!%p1023_p11)
}
  0x3a   : > { %s1553_s2 = smov 8   ;;  %s1554_s6 = smov 128  }
  0x3b   : > { %903 = dma.hbm_to_vmem [thread:$0]  (!%p1312_p5), %s214_s30, 512, %s216_s8, %s204_s19, %s1554_s6, %s1554_s6, %s1553_s2  }
  0x3c   : > { %s225_s13 = sand.u32 1, %s1173_s20   ;;  %s1040_s26 = scalar_lea.vmem %s238_s29, 512 }
  0x3d   : > { %s226_s14 = scalar_lea.sflag [#allocation6], %s225_s13  ;;  %p1041_p2 = scmp.ne.s32.totalorder %s238_s29, %s1040_s26 }
  0x3e   : > { %s1179_s12 = smov [#allocation5]  }
  0x3f   : > { %p1043_p6 = pnand %p1041_p2, %p1001_p7  ;;  %s1045_s27 = sshll.u32 %s1179_s12, 4  ;;  %s1046_s27 = int_to_ptr.vmem [resolvable:$false] %s1045_s27 }
  0x40   : > { %s1047_s10 = scalar_lea.vmem %s1046_s27, 1024  ;;  %p1048_p9 = scmp.lt.s32.totalorder %s238_s29, %s1046_s27 }
  0x41   : > { %p1044_p10 = pneg %p1043_p6  ;;  %p1049_p12 = scmp.lt.s32.totalorder %s1047_s10, %s1040_s26 }
  0x43   : > { %p1050_p13 = por %p1049_p12, %p1048_p9 }
  0x45   : > { %p1051_p3 = pnand %p1050_p13, %p1044_p10 }
  0x47   : > { %1054 = shalt.err (!%p1051_p3)
}
  0x48   : > { %906 = dma.hbm_to_vmem [thread:$0]  (!%p1312_p5), %s1319_s9, 512, %s238_s29, %s226_s14, %s1554_s6, %s1554_s6, %s1553_s2  }
  0x49   : > { %249 = sbr.rel (%p1259_p8) target bundleno = 496 (0x1f0), region = 32  ;;  %s1344_s19 = sand.u32 (!%p1259_p8), 1, %s1157_s16  }
  0x4a   : > { %s1347_s30 = sshll.u32 (!%p1259_p8), %s1344_s19, 5  ;;  %s252_s8 = scalar_lea.sflag (!%p1259_p8), [#allocation3], %s1344_s19 }
  0x4b   : > { %s1351_s28 = scalar_lea.vmem (!%p1259_p8), [#allocation2], %s1347_s30 }
  0x4e   : > { %1132 = dma.done.wait (%p1249_p4), %s252_s8, 512  }
  0x4f   : > { %1134 = vsyncadd (%p1249_p4), %s252_s8, 4294966784  ;;  %s260_s25 = sand.u32 1, %s1240_s21   ;;  %s1359_s5 = scalar_lea.vmem [#allocation5], %s1347_s30 }
  0x50   : > { %s261_s29 = scalar_lea.sflag [#allocation6], %s260_s25 }
  0x51   : > { %1136 = dma.done.wait (%p1249_p4), %s261_s29, 512  }
  0x52   : > { %1138 = vsyncadd (%p1249_p4), %s261_s29, 4294966784 }
  0x53   : > { %1140 = dma.done.wait (%p62_p1), [#allocation6], 512  }
  0x54   : > { %1142 = vsyncadd (%p62_p1), [#allocation6], 4294966784  ;;  %vm311_vm0 = vcmask 261120   ;;  %v306_v0 = vld [vmem:[#allocation7 + $0x18] sm:$0xff]  ;;  %v305_v1 = vld [vmem:[#allocation7 + $0x10] sm:$0xff]  ;;  %s295_s21 = scalar_lea.vmem [#allocation8], %s1347_s30 }
  0x55   : > { %830 = vmatprep.subr.mxu1 %v306_v0  ;;  %v413_v2 = vld [vmem:[%s1359_s5] sm:$0xff]  ;;  %816 = vmatprep.subr.mxu0 %v306_v0  ;;  %v304_v3 = vld [vmem:[#allocation7 + $0x8] sm:$0xff]  ;;  %v415_v6 = vld [vmem:[%s1359_s5 + $0x10] sm:$0xff]  ;;  %s593_s23 = sshll.u32 %s295_s21, 4  ;;  %s798_s9 = sshll.u32 %s1165_s18, 9  ;;  %s1415_s23 = int_to_ptr.vmem [resolvable:$true] %s593_s23 }
  0x56   : > { %831 = vmatpush3.msra.mxu1 %v306_v0  ;;  %838 = vmatprep.mubr.msk.f32.mxu1 %vm311_vm0, %v413_v2  ;;  %v303_v4 = vld [vmem:[#allocation7] sm:$0xff]  ;;  %v414_v5 = vld [vmem:[%s1359_s5 + $0x8] sm:$0xff]  ;;  %v309_v9 = vld [vmem:[%s1351_s28 + $0x10] sm:$0xff]  ;;  %s1424_s6 = scalar_lea.hbm %s1533_s3, %s798_s9  ;;  %s574_s13 = scalar_lea.sflag [#allocation4], %s1344_s19 }
  0x57   : > { %832 = vmatprep.subr.mxu1 %v305_v1  ;;  %817 = vmatpush3.msra.mxu0 %v306_v0  ;;  %v307_v7 = vld [vmem:[%s1351_s28] sm:$0xff]  ;;  %v308_v8 = vld [vmem:[%s1351_s28 + $0x8] sm:$0xff]  ;;  %v416_v10 = vld [vmem:[%s1359_s5 + $0x18] sm:$0xff]  ;;  %s1055_s14 = scalar_lea.vmem %s1415_s23, 512  ;;  %s1180_s26 = smov [#allocation8]  }
  0x58   : > { %833 = vmatpush3.msra.mxu1 %v305_v1  ;;  %818 = vmatprep.subr.mxu0 %v305_v1  ;;  %v310_v11 = vld [vmem:[%s1351_s28 + $0x18] sm:$0xff]  ;;  %p1056_p1 = scmp.ne.s32.totalorder %s1415_s23, %s1055_s14  ;;  %s1059_s12 = sshll.u32 %s1180_s26, 4  ;;  %s1060_s12 = int_to_ptr.vmem [resolvable:$false] %s1059_s12 }
  0x59   : > { %834 = vmatprep.subr.mxu1 %v304_v3  ;;  %819 = vmatpush3.msra.mxu0 %v305_v1  ;;  %s1061_s27 = scalar_lea.vmem %s1060_s12, 1024  ;;  %p1062_p10 = scmp.lt.s32.totalorder %s1415_s23, %s1060_s12 }
  0x5a   : > { %835 = vmatpush3.msra.mxu1 %v304_v3  ;;  %820 = vmatprep.subr.mxu0 %v304_v3  ;;  %p1057_p4 = pnand %p1056_p1, %p1295_p0  ;;  %p1063_p5 = scmp.lt.s32.totalorder %s1061_s27, %s1055_s14 }
  0x5b   : > { %836 = vmatprep.subr.mxu1 %v303_v4  ;;  %821 = vmatpush3.msra.mxu0 %v304_v3 }
  0x5c   : > { %837 = vmatpush3.msra.mxu1 %v303_v4  ;;  %822 = vmatprep.subr.mxu0 %v303_v4  ;;  %p1058_p8 = pneg %p1057_p4  ;;  %p1064_p7 = por %p1063_p5, %p1062_p10 }
  0x5d   : > { %839 = vmatmul.mubr.msk.f32.vlgmr.msra.gmra.mxu1 %vm311_vm0, %v414_v5  ;;  %823 = vmatpush3.msra.mxu0 %v303_v4 }
  0x5e   : > { %841 = vmatprep.mubr.msk.f32.mxu1 %vm311_vm0, %v415_v6  ;;  %824 = vmatprep.mubr.msk.f32.mxu0 %vm311_vm0, %v307_v7  ;;  %p1065_p11 = pnand %p1064_p7, %p1058_p8 }
  0x5f   : > { %825 = vmatmul.mubr.msk.f32.vlgmr.msra.gmra.mxu0 %vm311_vm0, %v308_v8 }
  0x60   : > { %827 = vmatprep.mubr.msk.f32.mxu0 %vm311_vm0, %v309_v9 }
  0x61   : > { %842 = vmatmul.mubr.msk.f32.gmra.mxu1 %vm311_vm0, %v416_v10 }
  0x63   : > { %828 = vmatmul.mubr.msk.f32.gmra.mxu0 %vm311_vm0, %v310_v11 }
 0x11d   : > { %v1385_v12 = vpop.f32.mrf.mxu1 }
 0x11e   : > { %v515_v16 = vsel %vm311_vm0, %v1385_v12, inf  ;;  %v525_v26 = vsel %vm311_vm0, %v1385_v12, -inf }
 0x11f   : > { %v1387_v13 = vpop.f32.mrf.mxu1  ;;  %v826_v32 = vpop.f32.mrf.mxu0 }
 0x120   : > { %v514_v15 = vsel %vm311_vm0, %v1387_v13, inf  ;;  %v524_v17 = vsel %vm311_vm0, %v1387_v13, -inf  ;;  %410 = vst.msk [vmem:[%s295_s21 + $0x8] sm:$0xff] %vm311_vm0, %v826_v32 }
 0x121   : > { %v1389_v14 = vpop.f32.mrf.mxu1  ;;  %v518_v25 = vmin.f32 %v514_v15, %v515_v16  ;;  %v528_v28 = vmax.f32 %v524_v17, %v525_v26  ;;  %v390_v33 = vpop.f32.mrf.mxu0 }
 0x122   : > { %v517_v19 = vsel %vm311_vm0, %v1389_v14, inf  ;;  %v527_v20 = vsel %vm311_vm0, %v1389_v14, -inf  ;;  %409 = vst.msk [vmem:[%s295_s21] sm:$0xff] %vm311_vm0, %v390_v33 }
 0x123   : > { %v1397_v18 = vpop.f32.mrf.mxu1  ;;  %v829_v34 = vpop.f32.mrf.mxu0 }
 0x124   : > { %v516_v21 = vsel %vm311_vm0, %v1397_v18, inf  ;;  %v526_v22 = vsel %vm311_vm0, %v1397_v18, -inf  ;;  %412 = vst.msk [vmem:[%s295_s21 + $0x18] sm:$0xff] %vm311_vm0, %v829_v34 }
 0x125   : > { %v519_v23 = vmin.f32 %v516_v21, %v517_v19  ;;  %v529_v24 = vmax.f32 %v526_v22, %v527_v20  ;;  %v400_v35 = vpop.f32.mrf.mxu0 }
 0x126   : > { %411 = vst.msk [vmem:[%s295_s21 + $0x10] sm:$0xff] %vm311_vm0, %v400_v35 }
 0x127   : > { %v520_v27 = vmin.f32 %v518_v25, %v519_v23  ;;  %v530_v30 = vmax.f32 %v528_v28, %v529_v24 }
 0x129   : > { %v521_v29 = vsel %vm311_vm0, %v520_v27, inf  ;;  %v531_v31 = vsel %vm311_vm0, %v530_v30, -inf }
 0x12a   : > { %522 = vmin.xlane.f32.xlu0 %v521_v29 }
 0x12e   : > { %532 = vmax.xlane.f32.xlu0 %v531_v31 }
 0x12f   : > { %1068 = shalt.err (!%p1065_p11)
}
 0x130   : > { %s1069_s10 = scalar_lea.hbm %s1424_s6, 512  ;;  %s1073_s25 = scalar_lea.hbm %s1533_s3, 1024 }
 0x131   : > { %p1070_p2 = scmp.ne.s32.totalorder %s1424_s6, %s1069_s10  ;;  %p1074_p12 = scmp.lt.s32.totalorder %s1424_s6, %s1533_s3 }
 0x132   : > { %p1075_p13 = scmp.lt.s32.totalorder %s1073_s25, %s1069_s10 }
 0x133   : > { %p1071_p6 = pnand %p1070_p2, %p1295_p0 }
 0x134   : > { %p1076_p3 = por %p1075_p13, %p1074_p12 }
 0x135   : > { %p1072_p9 = pneg %p1071_p6 }
 0x137   : > { %p1077_p1 = pnand %p1076_p3, %p1072_p9 }
 0x139   : > { %1080 = shalt.err (!%p1077_p1)
}
 0x13a   : > { %s1181_s21 = smov 128   ;;  %s1182_s7 = smov 8  }
 0x13b   : > { %892 = dma.vmem_to_hbm [thread:$0]  (%p1295_p0), %s1415_s23, 512, %s1424_s6, %s574_s13, %s1181_s21, %s1181_s21, %s1182_s7  }
 0x13c   : > { %s302_s23 = scalar_lea.vmem [#allocation9], %s1347_s30  ;;  %s1477_s14 = scalar_lea.hbm %s1534_s4, %s798_s9 }
 0x13d   : > { %s610_s2 = sshll.u32 %s302_s23, 4  ;;  %s579_s30 = scalar_lea.sflag [#allocation10], %s1344_s19  ;;  %s1479_s2 = int_to_ptr.vmem [resolvable:$true] %s610_s2 }
 0x13e   : > { %s1081_s26 = scalar_lea.vmem %s1479_s2, 512  ;;  %s1183_s18 = smov [#allocation9]  }
 0x13f   : > { %p1082_p4 = scmp.ne.s32.totalorder %s1479_s2, %s1081_s26  ;;  %s1085_s12 = sshll.u32 %s1183_s18, 4  ;;  %s1086_s12 = int_to_ptr.vmem [resolvable:$false] %s1085_s12 }
 0x140   : > { %s1087_s9 = scalar_lea.vmem %s1086_s12, 1024  ;;  %p1088_p5 = scmp.lt.s32.totalorder %s1479_s2, %s1086_s12 }
 0x141   : > { %p1083_p8 = pnand %p1082_p4, %p1295_p0  ;;  %p1089_p7 = scmp.lt.s32.totalorder %s1087_s9, %s1081_s26 }
 0x143   : > { %p1084_p10 = pneg %p1083_p8  ;;  %p1090_p11 = por %p1089_p7, %p1088_p5 }
 0x145   : > { %p1091_p2 = pnand %p1090_p11, %p1084_p10 }
 0x1b3   : > { %v523_v36 = vpop.xlane.xlu0 %522 }
 0x1b4   : > { %v534_v37 = vmin.f32 %v523_v36, 0.0 }
 0x1b6   : > { %vm536_vm1 = vcmp.eq.f32.partialorder %v534_v37, 0.0 }
 0x1b7   : > { %v533_v38 = vpop.xlane.xlu0 %532 }
 0x1b8   : > { %v535_v39 = vmax.f32 %v533_v38, 0.0 }
 0x1ba   : > { %vm537_vm2 = vcmp.eq.f32.partialorder %v535_v39, 0.0 }
 0x1bb   : > { %vm538_vm3 = vmand %vm536_vm1, %vm537_vm2 }
 0x1bc   : > { %v539_v40 = vsel %vm538_vm3, -1.0, %v534_v37  ;;  %v540_v41 = vsel %vm538_vm3, 1.0, %v535_v39 }
 0x1bd   : > { %v541_v42 = vsub.f32 %v540_v41, %v539_v40  ;;  %v544_v44 = vsub.f32 0.0, %v539_v40 }
 0x1bf   : > { %v1452_v43 = vmul.f32 0.003921569, %v541_v42 }
 0x1c1   : > { %971 = vrcp.f32 %v1452_v43 }
 0x1ce   : > { %v972_v45 = vpop.eup %971 }
 0x1cf   : > { %v545_v46 = vmul.f32 %v972_v45, %v544_v44  ;;  %v547_v47 = vmul.f32 %v972_v45, %v1387_v13  ;;  %v548_v48 = vmul.f32 %v972_v45, %v1385_v12  ;;  %v549_v50 = vmul.f32 %v972_v45, %v1397_v18 }
 0x1d0   : > { %v550_v51 = vmul.f32 %v972_v45, %v1389_v14 }
 0x1d1   : > { %v846_v49 = vcvt.f32.s32 %v545_v46  ;;  %v854_v52 = vcvt.f32.s32 %v547_v47  ;;  %v862_v53 = vcvt.f32.s32 %v548_v48  ;;  %v844_v54 = vand.u32 2147483647, %v545_v46 }
 0x1d2   : > { %v849_v56 = vand.u32 2147483648, %v545_v46  ;;  %v852_v57 = vand.u32 2147483647, %v547_v47  ;;  %v857_v61 = vand.u32 2147483648, %v547_v47  ;;  %v860_v62 = vand.u32 2147483647, %v548_v48 }
 0x1d3   : > { %v847_v55 = vcvt.s32.f32 %v846_v49  ;;  %v855_v58 = vcvt.s32.f32 %v854_v52  ;;  %v863_v59 = vcvt.s32.f32 %v862_v53  ;;  %v870_v63 = vcvt.f32.s32 %v549_v50 }
 0x1d4   : > { %v865_v2 = vand.u32 2147483648, %v548_v48  ;;  %v878_v3 = vcvt.f32.s32 %v550_v51  ;;  %vm845_vm4 = vcmp.lt.f32.partialorder %v844_v54, 8388608.0  ;;  %v868_v5 = vand.u32 2147483647, %v549_v50 }
 0x1d5   : > { %v848_v60 = vand.u32 2147483647, %v847_v55  ;;  %v856_v0 = vand.u32 2147483647, %v855_v58  ;;  %v864_v1 = vand.u32 2147483647, %v863_v59  ;;  %v871_v6 = vcvt.s32.f32 %v870_v63 }
 0x1d6   : > { %vm1459_vm5 = vcmp.lt.f32.partialorder %v852_v57, 8388608.0  ;;  %v879_v10 = vcvt.s32.f32 %v878_v3  ;;  %v873_v13 = vand.u32 2147483648, %v549_v50  ;;  %v876_v14 = vand.u32 2147483647, %v550_v51 }
 0x1d7   : > { %v850_v4 = vor.u32 %v849_v56, %v848_v60  ;;  %v858_v8 = vor.u32 %v857_v61, %v856_v0  ;;  %v866_v9 = vor.u32 %v865_v2, %v864_v1  ;;  %v872_v12 = vand.u32 2147483647, %v871_v6 }
 0x1d8   : > { %vm861_vm6 = vcmp.lt.f32.partialorder %v860_v62, 8388608.0  ;;  %v880_v15 = vand.u32 2147483647, %v879_v10  ;;  %v881_v16 = vand.u32 2147483648, %v550_v51  ;;  %vm869_vm7 = vcmp.lt.f32.partialorder %v868_v5, 8388608.0 }
 0x1d9   : > { %v851_v11 = vsel %vm845_vm4, %v850_v4, %v545_v46  ;;  %v859_v18 = vsel %vm1459_vm5, %v858_v8, %v547_v47  ;;  %v867_v19 = vsel %vm861_vm6, %v866_v9, %v548_v48  ;;  %v874_v20 = vor.u32 %v873_v13, %v872_v12 }
 0x1da   : > { %v555_v17 = vsub.f32 0.0, %v851_v11  ;;  %v882_v21 = vor.u32 %v881_v16, %v880_v15  ;;  %v556_v22 = vsub.f32 255.0, %v851_v11  ;;  %vm877_vm8 = vcmp.lt.f32.partialorder %v876_v14, 8388608.0 }
 0x1db   : > { %v875_v25 = vsel %vm869_vm7, %v874_v20, %v549_v50 }
 0x1dc   : > { %v557_v23 = vmax.f32 %v555_v17, %v859_v18  ;;  %v558_v24 = vmax.f32 %v555_v17, %v867_v19  ;;  %v883_v26 = vsel %vm877_vm8, %v882_v21, %v550_v51  ;;  %v559_v27 = vmax.f32 %v555_v17, %v875_v25 }
 0x1dd   : > { %v560_v30 = vmax.f32 %v555_v17, %v883_v26 }
 0x1de   : > { %v561_v28 = vmin.f32 %v556_v22, %v557_v23  ;;  %v562_v29 = vmin.f32 %v556_v22, %v558_v24  ;;  %v563_v31 = vmin.f32 %v556_v22, %v559_v27 }
 0x1df   : > { %v564_v34 = vmin.f32 %v556_v22, %v560_v30 }
 0x1e0   : > { %v565_v32 = vmul.f32 %v561_v28, %v1452_v43  ;;  %v566_v33 = vmul.f32 %v562_v29, %v1452_v43  ;;  %v567_v35 = vmul.f32 %v563_v31, %v1452_v43 }
 0x1e1   : > { %v568_v36 = vmul.f32 %v564_v34, %v1452_v43 }
 0x1e2   : > { %569 = vst.msk [vmem:[%s302_s23] sm:$0xff] %vm311_vm0, %v565_v32  ;;  %570 = vst.msk [vmem:[%s302_s23 + $0x8] sm:$0xff] %vm311_vm0, %v566_v33 }
 0x1e3   : > { %571 = vst.msk [vmem:[%s302_s23 + $0x10] sm:$0xff] %vm311_vm0, %v567_v35  ;;  %572 = vst.msk [vmem:[%s302_s23 + $0x18] sm:$0xff] %vm311_vm0, %v568_v36 }
 0x1e4   : > { %1094 = shalt.err (!%p1091_p2)
}
 0x1e5   : > { %s1095_s27 = scalar_lea.hbm %s1477_s14, 512  ;;  %s1099_s8 = scalar_lea.hbm %s1534_s4, 1024 }
 0x1e6   : > { %p1096_p6 = scmp.ne.s32.totalorder %s1477_s14, %s1095_s27  ;;  %p1100_p13 = scmp.lt.s32.totalorder %s1477_s14, %s1534_s4 }
 0x1e7   : > { %p1101_p3 = scmp.lt.s32.totalorder %s1099_s8, %s1095_s27 }
 0x1e8   : > { %p1097_p9 = pnand %p1096_p6, %p1295_p0 }
 0x1e9   : > { %p1102_p1 = por %p1101_p3, %p1100_p13 }
 0x1ea   : > { %p1098_p12 = pneg %p1097_p9 }
 0x1ec   : > { %p1103_p4 = pnand %p1102_p1, %p1098_p12 }
 0x1ee   : > { %1106 = shalt.err (!%p1103_p4)
}
 0x1ef   : > { %893 = dma.vmem_to_hbm [thread:$0]  (%p1295_p0), %s1479_s2, 512, %s1477_s14, %s579_s30, %s1181_s21, %s1181_s21, %s1182_s7  }
 0x1f0 PF: > { %s625_s29 = sand.u32 1, %s1153_s15   ;;  %p1557_p8 = scmp.ne.s32.totalorder %s1544_s24, 0 }
 0x1f1   : > { %p1558_p10 = scmp.ge.s32.totalorder %s1173_s20, 2  ;;  %s626_s5 = scalar_lea.sflag [#allocation4], %s625_s29 }
 0x1f3   : > { %p908_p5 = pnand %p1558_p10, %p1557_p8 }
 0x1f5   : > { %p909_p7 = pneg %p908_p5 }
 0x1f7   : > { %1144 = dma.done.wait (%p909_p7), %s626_s5, 512  }
 0x1f8   : > { %1146 = vsyncadd (%p909_p7), %s626_s5, 4294966784  ;;  %s635_s23 = scalar_lea.sflag [#allocation10], %s625_s29 }
 0x1f9   : > { %1148 = dma.done.wait (%p909_p7), %s635_s23, 512  }
 0x1fa   : > { %1150 = vsyncadd (%p909_p7), %s635_s23, 4294966784  ;;  %s27_s20 = sadd.s32 1, %s1173_s20   ;;  %s1559_s18 = sld [smem:[#allocation16_spill]] }
 0x1fb   : > { %p24_p11 = scmp.ge.s32.totalorder %s27_s20, 4   ;;  %s1560_s19 = sld [smem:[#allocation17_spill]] }
 0x1fc   : > { %s1561_s15 = smov %s1157_s16  ;;  %s1562_s16 = smov %s1161_s17 }
 0x1fd   : > { %s1563_s17 = smov %s1304_s22  ;;  %26 = sbr.rel (!%p24_p11) target bundleno = 12 (0xc), region = 111 }
 0x202   :  { %640 = vsyncpa [#allocation3], 1 }
 0x203   :  { %642 = vsyncpa [#allocation3 + $0x1], 1 }
 0x204   :  { %643 = vsyncpa [#allocation6], 1 }
 0x205   :  { %645 = vsyncpa [#allocation6 + $0x1], 1 }
 0x206   :  { %646 = vsyncpa [#allocation4], 1 }
 0x207   :  { %648 = vsyncpa [#allocation4 + $0x1], 1 }
 0x208   :  { %649 = vsyncpa [#allocation10], 1 }
 0x209   :  { %651 = vsyncpa [#allocation10 + $0x1], 1 }

</bundles_post_ra>
